<compile_context>
chip_gen: v7x
topology: tpu7x:2x2x1
jax: 0.10.0
libtpu: 0.0.40
codegen_flags: <defaults>
</compile_context>

<pallas_src>
import jax
import jax.numpy as jnp
from jax.experimental import pallas as pl
from jax.experimental.pallas import tpu as pltpu

LANE = 128


def _round_up(x: int, m: int) -> int:
    return ((x + m - 1) // m) * m


def ffnn_kernel(x_ref, w1_ref, b1_ref, w2_ref, b2_ref, o_ref):
    # x_ref:  (tb, D)  x.dtype     w1_ref: (D, Dp) bf16    b1_ref: (1, Dp) f32
    # w2_ref: (Dp, Np) bf16        b2_ref: (1, Np) f32     o_ref:  (tb, Np) bf16
    x = x_ref[...].astype(w1_ref.dtype)                       # bf16 cast on the VPU
    h = jnp.dot(x, w1_ref[...], preferred_element_type=jnp.float32)
    h = jnp.maximum(h + b1_ref[...], 0.0)                     # bias + relu in f32
    y = jnp.dot(h.astype(w2_ref.dtype), w2_ref[...],
                preferred_element_type=jnp.float32)
    o_ref[...] = (y + b2_ref[...]).astype(o_ref.dtype)


def prepare_ffnn_params(w1, b1, w2, b2, *, compute_dtype=jnp.bfloat16):
    """Pad / cast parameters ONCE at init time (not per forward call).

    w1: (D, D)   = fc1.weight.T     b1: (D,)
    w2: (D, out) = fc2.weight.T     b2: (out,)

    Only the *output* dims are padded to 128 lanes; contraction dims stay at D.
    Padded w1 columns / b1 entries are zero, so padded hidden columns are
    exactly relu(0) = 0 and (with zero-padded w2 rows) contribute nothing.
    """
    D = w1.shape[0]
    out_dim = w2.shape[1]
    Dp = _round_up(D, LANE)           # hidden dim, lane-dense
    Np = _round_up(out_dim, LANE)     # logit dim, lane-dense (unmasked vst)

    w1p = jnp.zeros((D, Dp), compute_dtype).at[:, :D].set(w1.astype(compute_dtype))
    b1p = jnp.zeros((1, Dp), jnp.float32).at[:, :D].set(
        b1.astype(jnp.float32).reshape(1, D))
    w2p = jnp.zeros((Dp, Np), compute_dtype).at[:D, :out_dim].set(
        w2.astype(compute_dtype))
    b2p = jnp.zeros((1, Np), jnp.float32).at[:, :out_dim].set(
        b2.astype(jnp.float32).reshape(1, out_dim))

    return dict(w1=w1p, b1=b1p, w2=w2p, b2=b2p, D=D, out_dim=out_dim,
                compute_dtype=compute_dtype)


def _pick_tb(batch: int) -> int:
    if batch >= 512:
        return 256    # fill the 256-wide MXU rows (v6e/v7x) and keep >= 2 grid steps
    if batch > 128:
        return 128    # >= 2 grid steps so both v7x TensorCores get work
    return max(16, _round_up(batch, 16))   # single block for tiny batches


def ffnn_forward(x, params, *, tb=None):
    """x: (B, D) unpadded activations; params: output of prepare_ffnn_params."""
    B, D = x.shape
    assert D == params["D"], "feature dim mismatch with prepared params"
    w1p, b1p, w2p, b2p = params["w1"], params["b1"], params["w2"], params["b2"]
    out_dim = params["out_dim"]
    cdtype = params["compute_dtype"]
    Dp, Np = w1p.shape[1], w2p.shape[1]

    if tb is None:
        tb = _pick_tb(B)
    assert tb % 8 == 0, "batch tile must be a multiple of the sublane count"

    n_blocks = pl.cdiv(B, tb)
    grid = (n_blocks,)

    cd_bytes = jnp.dtype(cdtype).itemsize
    x_bytes = jnp.dtype(x.dtype).itemsize

    flops = 2 * n_blocks * tb * (D * Dp + Dp * Np)
    bytes_accessed = (B * D * x_bytes
                      + (w1p.size + w2p.size) * cd_bytes
                      + (b1p.size + b2p.size) * 4
                      + B * Np * cd_bytes)

    # Default double-buffering of every operand; cap at 48 MiB so the same
    # kernel stays inside v7x's 64 MiB physical VMEM (v5e/v6e have 128 MiB).
    weight_bytes = (w1p.size + w2p.size) * cd_bytes + (b1p.size + b2p.size) * 4
    io_bytes = tb * D * x_bytes + tb * Np * cd_bytes
    vmem_limit = int(min(max(2 * (weight_bytes + io_bytes) + (2 << 20), 16 << 20),
                         48 << 20))

    # TODO(synk): for large D where double-buffered w1/w2 exceed ~24-28 MiB
    # (v7x budget), single-buffer the constant weight blocks
    # (pipeline_mode=pl.Buffered(1)) and/or add a trailing "arbitrary" K grid
    # axis with an f32 accumulator scratch instead of keeping weights resident.

    out = pl.pallas_call(
        ffnn_kernel,
        out_shape=jax.ShapeDtypeStruct((B, Np), cdtype),
        grid_spec=pltpu.PrefetchScalarGridSpec(
            num_scalar_prefetch=0,
            grid=grid,
            in_specs=[
                pl.BlockSpec((tb, D), lambda i: (i, 0)),    # x tile (partial edge OK)
                pl.BlockSpec((D, Dp), lambda i: (0, 0)),    # w1 (VMEM resident)
                pl.BlockSpec((1, Dp), lambda i: (0, 0)),    # b1 (resident)
                pl.BlockSpec((Dp, Np), lambda i: (0, 0)),   # w2 (resident)
                pl.BlockSpec((1, Np), lambda i: (0, 0)),    # b2 (resident)
            ],
            out_specs=pl.BlockSpec((tb, Np), lambda i: (i, 0)),
        ),
        compiler_params=pltpu.CompilerParams(
            dimension_semantics=("parallel",),              # shard batch over TCs (v7x)
            vmem_limit_bytes=vmem_limit,
        ),
        cost_estimate=pl.CostEstimate(
            flops=flops, transcendentals=0, bytes_accessed=bytes_accessed),
    )(x, w1p, b1p, w2p, b2p)

    # NOTE: at tiny sizes (D*out << 128*128, small B) a plain XLA x@w1 path is
    # competitive; callers may gate on size.  The kernel's win is the fused
    # ReLU (no intermediate HBM round trip) once D / B are non-trivial.
    return out[:, :out_dim].astype(x.dtype)


if __name__ == "__main__":
    # config.ffnn.input_size stand-in: small feature dim.  Batch deliberately
    # not a multiple of the 128-row tile so the partial-edge-block path is
    # exercised, and the grid has 2 steps (both v7x cores busy).
    INPUT_SIZE = 32
    BATCH = 200

    key = jax.random.PRNGKey(0)
    kx, kw1, kb1, kw2, kb2 = jax.random.split(key, 5)

    # Deterministic init mimicking nn.Linear's uniform(-1/sqrt(fan_in), ...).
    bound1 = 1.0 / jnp.sqrt(jnp.float32(INPUT_SIZE))
    w1 = jax.random.uniform(kw1, (INPUT_SIZE, INPUT_SIZE), jnp.float32,
                            -bound1, bound1)                # fc1.weight.T
    b1 = jax.random.uniform(kb1, (INPUT_SIZE,), jnp.float32, -bound1, bound1)

    bound2 = 1.0 / jnp.sqrt(jnp.float32(INPUT_SIZE))
    w2 = jax.random.uniform(kw2, (INPUT_SIZE, 2), jnp.float32,
                            -bound2, bound2)                # fc2.weight.T
    b2 = jax.random.uniform(kb2, (2,), jnp.float32, -bound2, bound2)

    x = jax.random.normal(kx, (BATCH, INPUT_SIZE), jnp.float32)

    # Padding / casting of parameters happens exactly once, here.
    params = prepare_ffnn_params(w1, b1, w2, b2)

    out = ffnn_forward(x, params)
    jax.block_until_ready(out)

    # Reference with the same bf16 rounding / f32 accumulation as the kernel.
    cd = jnp.bfloat16
    xc = x.astype(cd).astype(jnp.float32)
    w1c = w1.astype(cd).astype(jnp.float32)
    w2c = w2.astype(cd).astype(jnp.float32)
    h = jnp.maximum(xc @ w1c + b1, 0.0).astype(cd).astype(jnp.float32)
    ref = h @ w2c + b2

    assert out.shape == (BATCH, 2)
    err = jnp.max(jnp.abs(out - ref))
    assert jnp.allclose(out, ref, atol=2e-2, rtol=2e-2), f"max abs err {err}"

    print("KERNEL_OK")
</pallas_src>

<mosaic_0001>
module attributes {stable_mosaic.version = 11 : i64} {
  func.func @ffnn_kernel(%arg0: i32, %arg1: memref<128x32xf32, #tpu.memory_space<vmem>>, %arg2: memref<32x128xbf16, #tpu.memory_space<vmem>>, %arg3: memref<1x128xf32, #tpu.memory_space<vmem>>, %arg4: memref<128x128xbf16, #tpu.memory_space<vmem>>, %arg5: memref<1x128xf32, #tpu.memory_space<vmem>>, %arg6: memref<128x128xbf16, #tpu.memory_space<vmem>>) attributes {dimension_semantics = [#tpu.dimension_semantics<parallel>], iteration_bounds = array<i64: 2>, scalar_prefetch = 0 : i64, scratch_operands = 0 : i64, tpu.core_type = #tpu.core_type<tc>, window_params = [{transform_indices = @transform_0, window_bounds = array<i64: 128, 32>}, {pipeline_mode = #tpu.pipeline_mode<synchronous>, transform_indices = @transform_1, window_bounds = array<i64: 32, 128>}, {pipeline_mode = #tpu.pipeline_mode<synchronous>, transform_indices = @transform_2, window_bounds = array<i64: 1, 128>}, {pipeline_mode = #tpu.pipeline_mode<synchronous>, transform_indices = @transform_3, window_bounds = array<i64: 128, 128>}, {pipeline_mode = #tpu.pipeline_mode<synchronous>, transform_indices = @transform_4, window_bounds = array<i64: 1, 128>}, {transform_indices = @transform_5, window_bounds = array<i64: 128, 128>}]} {
    %c0 = arith.constant 0 : index
    %c0_0 = arith.constant 0 : index
    %0 = vector.load %arg1[%c0, %c0_0] : memref<128x32xf32, #tpu.memory_space<vmem>>, vector<128x32xf32>
    %1 = arith.truncf %0 : vector<128x32xf32> to vector<128x32xbf16>
    %c0_1 = arith.constant 0 : index
    %c0_2 = arith.constant 0 : index
    %2 = vector.load %arg2[%c0_1, %c0_2] : memref<32x128xbf16, #tpu.memory_space<vmem>>, vector<32x128xbf16>
    %cst = arith.constant dense<0.000000e+00> : vector<128x128xf32>
    %3 = tpu.matmul %1, %2, %cst {dimension_numbers = #tpu.dot_dimension_numbers<[1], [0], [0], [1], [0, 0, 1, 1], [], []>} : vector<128x32xbf16>, vector<32x128xbf16>, vector<128x128xf32> -> vector<128x128xf32>
    %c0_3 = arith.constant 0 : index
    %c0_4 = arith.constant 0 : index
    %4 = vector.load %arg3[%c0_3, %c0_4] : memref<1x128xf32, #tpu.memory_space<vmem>>, vector<1x128xf32>
    %5 = vector.broadcast %4 : vector<1x128xf32> to vector<128x128xf32>
    %6 = arith.addf %3, %5 : vector<128x128xf32>
    %cst_5 = arith.constant 0.000000e+00 : f32
    %7 = vector.broadcast %cst_5 : f32 to vector<128x128xf32>
    %8 = arith.maximumf %6, %7 : vector<128x128xf32>
    %9 = arith.truncf %8 : vector<128x128xf32> to vector<128x128xbf16>
    %c0_6 = arith.constant 0 : index
    %c0_7 = arith.constant 0 : index
    %10 = vector.load %arg4[%c0_6, %c0_7] : memref<128x128xbf16, #tpu.memory_space<vmem>>, vector<128x128xbf16>
    %cst_8 = arith.constant dense<0.000000e+00> : vector<128x128xf32>
    %11 = tpu.matmul %9, %10, %cst_8 {dimension_numbers = #tpu.dot_dimension_numbers<[1], [0], [0], [1], [0, 0, 1, 1], [], []>} : vector<128x128xbf16>, vector<128x128xbf16>, vector<128x128xf32> -> vector<128x128xf32>
    %c0_9 = arith.constant 0 : index
    %c0_10 = arith.constant 0 : index
    %12 = vector.load %arg5[%c0_9, %c0_10] : memref<1x128xf32, #tpu.memory_space<vmem>>, vector<1x128xf32>
    %13 = vector.broadcast %12 : vector<1x128xf32> to vector<128x128xf32>
    %14 = arith.addf %11, %13 : vector<128x128xf32>
    %15 = arith.truncf %14 : vector<128x128xf32> to vector<128x128xbf16>
    %c0_11 = arith.constant 0 : index
    %c0_12 = arith.constant 0 : index
    %16 = vector.load %arg6[%c0_11, %c0_12] : memref<128x128xbf16, #tpu.memory_space<vmem>>, vector<128x128xbf16>
    tpu.vector_store %arg6[%c0_11, %c0_12], %15 {strides = array<i32>} : memref<128x128xbf16, #tpu.memory_space<vmem>>, vector<128x128xbf16>,
    return
  }
  func.func @transform_0(%arg0: i32) -> (i32, i32) {
    %c0_i32 = arith.constant 0 : i32
    %c0_i32_0 = arith.constant 0 : i32
    return %arg0, %c0_i32 : i32, i32
  }
  func.func @transform_1(%arg0: i32) -> (i32, i32) {
    %c0_i32 = arith.constant 0 : i32
    %c0_i32_0 = arith.constant 0 : i32
    %c0_i32_1 = arith.constant 0 : i32
    return %c0_i32, %c0_i32_0 : i32, i32
  }
  func.func @transform_2(%arg0: i32) -> (i32, i32) {
    %c0_i32 = arith.constant 0 : i32
    %c0_i32_0 = arith.constant 0 : i32
    %c0_i32_1 = arith.constant 0 : i32
    return %c0_i32, %c0_i32_0 : i32, i32
  }
  func.func @transform_3(%arg0: i32) -> (i32, i32) {
    %c0_i32 = arith.constant 0 : i32
    %c0_i32_0 = arith.constant 0 : i32
    %c0_i32_1 = arith.constant 0 : i32
    return %c0_i32, %c0_i32_0 : i32, i32
  }
  func.func @transform_4(%arg0: i32) -> (i32, i32) {
    %c0_i32 = arith.constant 0 : i32
    %c0_i32_0 = arith.constant 0 : i32
    %c0_i32_1 = arith.constant 0 : i32
    return %c0_i32, %c0_i32_0 : i32, i32
  }
  func.func @transform_5(%arg0: i32) -> (i32, i32) {
    %c0_i32 = arith.constant 0 : i32
    %c0_i32_0 = arith.constant 0 : i32
    return %arg0, %c0_i32 : i32, i32
  }
}

</mosaic_0001>

<bundles_post_ra>
// kernel: tpu_custom_call.1
= control target key start
LH: loop header
LB: loop body
LE: loop exit
PB: predicated region body
PF: predicated region fallthrough
CT: control target
= control target key end

     0   :  { %10 = vsyncpa [#allocation3], 0  ;;  %s1325_s0 = inlined_call_operand.vmem [shape: f32[200,32], index: 0, kind: input, shape index: {}]   ;;  %s1326_s1 = inlined_call_operand.vmem [shape: bf16[32,128], index: 1, kind: input, shape index: {}]   ;;  %s1327_s2 = inlined_call_operand.vmem [shape: f32[1,128], index: 2, kind: input, shape index: {}]   ;;  %s1328_s3 = inlined_call_operand.vmem [shape: bf16[128,128], index: 3, kind: input, shape index: {}]   ;;  %s1329_s4 = inlined_call_operand.vmem [shape: f32[1,128], index: 4, kind: input, shape index: {}]   ;;  %s1330_s5 = inlined_call_operand.hbm [shape: bf16[200,128], index: 5, kind: output, shape index: {}]  }
   0x1   :  { %12 = vsyncpa [#allocation3 + $0x1], 0  ;;  %s1131_s18 = smov 0   ;;  %s1133_s19 = smov 0  }
   0x2   :  { %s1135_s20 = smov 0   ;;  %s1137_s21 = smov 0  }
   0x3 LB: > { %s1152_s22 = sadd.s32 4294967295, %s1096_s21   ;;  %s774_s23 = sadd.s32 4294967294, %s1096_s21   ;;  %s1096_s21 = sphi %s1137_s21, %s1336_s21   ;;  %s1092_s20 = sphi %s1135_s20, %s1335_s20   ;;  %s1088_s19 = sphi %s1133_s19, %s1334_s19   ;;  %s1084_s18 = sphi %s1131_s18, %s1333_s18  }
   0x4   : > { %s1156_s24 = sadd.s32 1, %s1096_s21   ;;  %s135_s25 = sadd.s32 1, %s1092_s20 }
   0x5   : > { %s132_s26 = ssub.s32 %s1096_s21, %s1156_s24  ;;  %p145_p0 = scmp.ne.s32.totalorder %s1092_s20, %s1088_s19 }
   0x6   : > { %p133_p1 = scmp.eq.s32.totalorder %s132_s26, 0  ;;  %p146_p2 = scmp.eq.s32.totalorder %s1152_s22, 1 }
   0x7   : > { %p151_p3 = scmp.ne.s32.totalorder %s1088_s19, %s1084_s18  ;;  %p152_p4 = scmp.eq.s32.totalorder %s774_s23, 1 }
   0x8   : > { %s1167_s27 = scalar_select %p133_p1, %s1092_s20, %s135_s25  }
   0x9   : > { %p1169_p5 = por %p146_p2, %p145_p0  ;;  %p1173_p6 = por %p152_p4, %p151_p3 }
   0xa   : > { %p777_p7 = scmp.ge.s32.totalorder %s1096_s21, 1  ;;  %p199_p8 = scmp.lt.s32.totalorder %s1096_s21, 3 }
   0xc   : > { %p200_p9 = pnand %p777_p7, %p199_p8 }
   0xd   : > { %v1024_v0 = vld [vmem:[%s1326_s1] sm:$0xff] (!%p200_p9)   ;;  %s1183_s7 = sshll.u32 (!%p200_p9), %s1152_s22, 4  ;;  %v1025_v1 = vld [vmem:[%s1326_s1 + $0x8] sm:$0xff] (!%p200_p9)   ;;  %v1028_v4 = vld [vmem:[%s1328_s3 + $0x10] sm:$0xff] (!%p200_p9)   ;;  %vm298_vm0 = vcmask (!%p200_p9), 261120  }
   0xe   : > { %203 = sbr.rel (%p200_p9) target bundleno = 523 (0x20b), region = 40  ;;  %p236_p10 = scmp.lt.s32.totalorder (!%p200_p9), %s1183_s7, 24  ;;  %916 = vmatprep.subr.bf16.mxu0 (!%p200_p9), %v1024_v0  ;;  %v1026_v2 = vld [vmem:[%s1328_s3] sm:$0xff] (!%p200_p9)   ;;  %v1027_v3 = vld [vmem:[%s1328_s3 + $0x8] sm:$0xff] (!%p200_p9)   ;;  %v1029_v16 = vld [vmem:[%s1328_s3 + $0x18] sm:$0xff] (!%p200_p9)  }
   0xf   : > { %917 = vmatpush3.bf16.msra.mxu0 (!%p200_p9), %v1024_v0  ;;  %968 = vmatprep.subr.bf16.mxu1 (!%p200_p9), %v1026_v2  ;;  %v1030_v21 = vld [vmem:[%s1328_s3 + $0x20] sm:$0xff] (!%p200_p9)   ;;  %v1031_v24 = vld [vmem:[%s1328_s3 + $0x28] sm:$0xff] (!%p200_p9)   ;;  %v1032_v32 = vld [vmem:[%s1328_s3 + $0x30] sm:$0xff] (!%p200_p9)  }
  0x10   : > { %918 = vmatprep.subr.bf16.mxu0 (!%p200_p9), %v1025_v1  ;;  %976 = vmatpush3.bf16.msra.mxu1 (!%p200_p9), %v1026_v2  ;;  %v1033_v33 = vld [vmem:[%s1328_s3 + $0x38] sm:$0xff] (!%p200_p9)   ;;  %v781_v34 = vld [vmem:[%s1327_s2] ss:$0 sm:$0xff] (!%p200_p9) }
  0x11   : > { %969 = vmatprep.subr.bf16.mxu1 (!%p200_p9), %v1027_v3 }
  0x13   : > { %919 = vmatpush3.bf16.msra.mxu0 (!%p200_p9), %v1025_v1 }
  0x14   : > { %936 = vmatprep.subr.bf16.mxu0 (!%p200_p9), %v1026_v2  ;;  %977 = vmatpush3.bf16.msra.mxu1 (!%p200_p9), %v1027_v3 }
  0x15   : > { %s237_s12 = scalar_select %p236_p10, %s1183_s7, 24  ;;  %970 = vmatprep.subr.bf16.mxu1 %v1028_v4 }
  0x16   : > { %s701_s9 = ssub.s32 (%p1169_p5), 25, %s1183_s7 }
  0x17   : > { %s780_s15 = sshll.u32 %s237_s12, 3  ;;  %p702_p11 = scmp.lt.s32.totalorder (%p1169_p5), %s701_s9, 16 }
  0x18   : > { %s1199_s23 = scalar_lea.vmem %s1325_s0, %s780_s15  ;;  %978 = vmatpush3.bf16.msra.mxu1 %v1028_v4 }
  0x19   : > { %v251_v5 = vld [vmem:[%s1199_s23] sm:$0xff]  ;;  %v252_v6 = vld [vmem:[%s1199_s23 + $0x8] sm:$0xff]  ;;  %v253_v7 = vld [vmem:[%s1199_s23 + $0x10] sm:$0xff]  ;;  %971 = vmatprep.subr.bf16.mxu1 %v1029_v16 }
  0x1a   : > { %v267_v8 = vpack.c.bf16 %v252_v6, %v251_v5  ;;  %v254_v9 = vld [vmem:[%s1199_s23 + $0x18] sm:$0xff]  ;;  %v255_v10 = vld [vmem:[%s1199_s23 + $0x20] sm:$0xff]  ;;  %v256_v11 = vld [vmem:[%s1199_s23 + $0x28] sm:$0xff] }
  0x1b   : > { %v268_v12 = vpack.c.bf16 %v254_v9, %v253_v7  ;;  %v269_v13 = vpack.c.bf16 %v256_v11, %v255_v10  ;;  %v257_v14 = vld [vmem:[%s1199_s23 + $0x30] sm:$0xff]  ;;  %v258_v15 = vld [vmem:[%s1199_s23 + $0x38] sm:$0xff]  ;;  %v259_v17 = vld [vmem:[%s1199_s23 + $0x40] sm:$0xff] }
  0x1c   : > { %920 = vmatprep.mubr.msk.bf16.mxu0 %vm298_vm0, %v267_v8  ;;  %v260_v18 = vld [vmem:[%s1199_s23 + $0x48] sm:$0xff]  ;;  %v270_v19 = vpack.c.bf16 %v258_v15, %v257_v14  ;;  %979 = vmatpush3.bf16.msra.mxu1 %v1029_v16  ;;  %v261_v22 = vld [vmem:[%s1199_s23 + $0x50] sm:$0xff]  ;;  %v262_v23 = vld [vmem:[%s1199_s23 + $0x58] sm:$0xff] }
  0x1d   : > { %921 = vmatmul.mubr.msk.bf16.vlgmr.msra.gmra.mrb[0].mxu0 %vm298_vm0, %v268_v12  ;;  %v271_v20 = vpack.c.bf16 %v260_v18, %v259_v17  ;;  %972 = vmatprep.subr.bf16.mxu1 %v1030_v21  ;;  %v263_v25 = vld [vmem:[%s1199_s23 + $0x60] sm:$0xff]  ;;  %v264_v26 = vld [vmem:[%s1199_s23 + $0x68] sm:$0xff]  ;;  %v272_v27 = vpack.c.bf16 %v262_v23, %v261_v22  ;;  %v265_v29 = vld [vmem:[%s1199_s23 + $0x70] sm:$0xff] }
  0x1e   : > { %924 = vmatprep.mubr.msk.bf16.mxu0 %vm298_vm0, %v269_v13  ;;  %937 = vmatpush3.bf16.msra.mxu0 %v1026_v2  ;;  %v273_v28 = vpack.c.bf16 %v264_v26, %v263_v25  ;;  %v266_v30 = vld [vmem:[%s1199_s23 + $0x78] sm:$0xff]  ;;  %s228_s23 = sand.u32 1, %s1088_s19  }
  0x1f   : > { %938 = vmatprep.subr.bf16.mxu0 %v1027_v3  ;;  %v274_v31 = vpack.c.bf16 %v266_v30, %v265_v29  ;;  %s778_s30 = sshll.u32 %s228_s23, 6  ;;  %s1264_s8 = scalar_lea.sflag [#allocation3], %s228_s23 }
  0x20   : > { %980 = vmatpush3.bf16.msra.mxu1 %v1030_v21  ;;  %s1252_s6 = scalar_lea.vmem [#allocation2], %s778_s30 }
  0x21   : > { %973 = vmatprep.subr.bf16.mxu1 %v1031_v24 }
  0x22   : > { %939 = vmatpush3.bf16.msra.mxu0 %v1027_v3 }
  0x23   : > { %940 = vmatprep.subr.bf16.mxu0 %v1028_v4 }
  0x24   : > { %981 = vmatpush3.bf16.msra.mxu1 %v1031_v24 }
  0x25   : > { %925 = vmatmul.mubr.msk.bf16.gmra.mrb[4].mxu0 %vm298_vm0, %v270_v19  ;;  %974 = vmatprep.subr.bf16.mxu1 %v1032_v32 }
  0x26   : > { %928 = vmatprep.mubr.msk.bf16.mxu0 %vm298_vm0, %v271_v20  ;;  %941 = vmatpush3.bf16.msra.mxu0 %v1028_v4 }
  0x27   : > { %942 = vmatprep.subr.bf16.mxu0 %v1029_v16 }
  0x28   : > { %982 = vmatpush3.bf16.msra.mxu1 %v1032_v32 }
  0x29   : > { %975 = vmatprep.subr.bf16.mxu1 %v1033_v33 }
  0x2a   : > { %943 = vmatpush3.bf16.msra.mxu0 %v1029_v16 }
  0x2b   : > { %944 = vmatprep.subr.bf16.mxu0 %v1030_v21 }
  0x2c   : > { %983 = vmatpush3.bf16.msra.mxu1 %v1033_v33 }
  0x2d   : > { %929 = vmatmul.mubr.msk.bf16.gmra.mrb[8].mxu0 %vm298_vm0, %v272_v27 }
  0x2e   : > { %932 = vmatprep.mubr.msk.bf16.mxu0 %vm298_vm0, %v273_v28  ;;  %945 = vmatpush3.bf16.msra.mxu0 %v1030_v21  ;;  %v792_v28 = vld [vmem:[%s1329_s4] ss:$0 sm:$0xff] }
  0x2f   : > { %946 = vmatprep.subr.bf16.mxu0 %v1031_v24 }
  0x32   : > { %947 = vmatpush3.bf16.msra.mxu0 %v1031_v24 }
  0x33   : > { %948 = vmatprep.subr.bf16.mxu0 %v1032_v32 }
  0x35   : > { %933 = vmatmul.mubr.msk.bf16.gmra.mrb[12].mxu0 %vm298_vm0, %v274_v31 }
  0x36   : > { %949 = vmatpush3.bf16.msra.mxu0 %v1032_v32 }
  0x37   : > { %950 = vmatprep.subr.bf16.mxu0 %v1033_v33 }
  0x3a   : > { %951 = vmatpush3.bf16.msra.mxu0 %v1033_v33 }
  0xf0   : > { %v922_v35 = vpop.f32.mrb[0].mxu0 }
  0xf1   : > { %v366_v36 = vadd.f32 %v922_v35, %v781_v34  ;;  %v357_v37 = vpop.f32.mrb[1].mxu0 }
  0xf2   : > { %v358_v38 = vadd.f32 %v781_v34, %v357_v37  ;;  %v923_v39 = vpop.f32.mrb[2].mxu0 }
  0xf3   : > { %v369_v40 = vadd.f32 %v923_v39, %v781_v34  ;;  %v360_v41 = vpop.f32.mrb[3].mxu0  ;;  %v422_v43 = vmax.f32 %v366_v36, 0.0 }
  0xf4   : > { %v361_v42 = vadd.f32 %v781_v34, %v360_v41  ;;  %v420_v45 = vmax.f32 %v358_v38, 0.0 }
  0xf5   : > { %v423_v44 = vmax.f32 %v369_v40, 0.0 }
  0xf6   : > { %v421_v46 = vmax.f32 %v361_v42, 0.0 }
  0xf7   : > { %v437_v47 = vpack.c.bf16 %v423_v44, %v422_v43 }
  0xf8   : > { %v436_v48 = vpack.c.bf16 %v421_v46, %v420_v45  ;;  %v926_v49 = vpop.f32.mrb[4].mxu0 }
  0xf9   : > { %v382_v50 = vadd.f32 %v926_v49, %v781_v34  ;;  %v373_v51 = vpop.f32.mrb[5].mxu0 }
  0xfa   : > { %v374_v52 = vadd.f32 %v781_v34, %v373_v51  ;;  %v927_v53 = vpop.f32.mrb[6].mxu0  ;;  %952 = vmatprep.mubr.bf16.mxu0 %v436_v48 }
  0xfb   : > { %v385_v54 = vadd.f32 %v927_v53, %v781_v34  ;;  %v376_v55 = vpop.f32.mrb[7].mxu0  ;;  %953 = vmatmul.mubr.bf16.vlgmr.msra.gmra.mrb[16].mxu0 %v437_v47  ;;  %v426_v57 = vmax.f32 %v382_v50, 0.0 }
  0xfc   : > { %v377_v56 = vadd.f32 %v781_v34, %v376_v55  ;;  %v424_v59 = vmax.f32 %v374_v52, 0.0 }
  0xfd   : > { %v427_v58 = vmax.f32 %v385_v54, 0.0 }
  0xfe   : > { %v425_v60 = vmax.f32 %v377_v56, 0.0 }
  0xff   : > { %v439_v61 = vpack.c.bf16 %v427_v58, %v426_v57 }
 0x100   : > { %v930_v62 = vpop.f32.mrb[8].mxu0  ;;  %v438_v63 = vpack.c.bf16 %v425_v60, %v424_v59 }
 0x101   : > { %v398_v0 = vadd.f32 %v930_v62, %v781_v34  ;;  %v389_v1 = vpop.f32.mrb[9].mxu0 }
 0x102   : > { %v390_v2 = vadd.f32 %v781_v34, %v389_v1  ;;  %v931_v3 = vpop.f32.mrb[10].mxu0  ;;  %956 = vmatprep.mubr.bf16.mxu1 %v438_v63 }
 0x103   : > { %v401_v4 = vadd.f32 %v931_v3, %v781_v34  ;;  %v392_v5 = vpop.f32.mrb[11].mxu0  ;;  %957 = vmatmul.mubr.bf16.vlgmr.msra.gmra.mrb[0].mxu1 %v439_v61  ;;  %v430_v7 = vmax.f32 %v398_v0, 0.0 }
 0x104   : > { %v393_v6 = vadd.f32 %v781_v34, %v392_v5  ;;  %v428_v9 = vmax.f32 %v390_v2, 0.0 }
 0x105   : > { %v431_v8 = vmax.f32 %v401_v4, 0.0 }
 0x106   : > { %v429_v10 = vmax.f32 %v393_v6, 0.0 }
 0x107   : > { %v441_v11 = vpack.c.bf16 %v431_v8, %v430_v7 }
 0x108   : > { %v440_v12 = vpack.c.bf16 %v429_v10, %v428_v9  ;;  %v934_v13 = vpop.f32.mrb[12].mxu0 }
 0x109   : > { %v414_v14 = vadd.f32 %v934_v13, %v781_v34  ;;  %v405_v15 = vpop.f32.mrb[13].mxu0 }
 0x10a   : > { %v406_v16 = vadd.f32 %v781_v34, %v405_v15  ;;  %v935_v17 = vpop.f32.mrb[14].mxu0  ;;  %960 = vmatprep.mubr.bf16.mxu1 %v440_v12 }
 0x10b   : > { %v417_v18 = vadd.f32 %v935_v17, %v781_v34  ;;  %v408_v19 = vpop.f32.mrb[15].mxu0  ;;  %961 = vmatmul.mubr.bf16.gmra.mrb[4].mxu1 %v441_v11  ;;  %v434_v21 = vmax.f32 %v414_v14, 0.0 }
 0x10c   : > { %v409_v20 = vadd.f32 %v781_v34, %v408_v19  ;;  %v432_v23 = vmax.f32 %v406_v16, 0.0 }
 0x10d   : > { %v435_v22 = vmax.f32 %v417_v18, 0.0 }
 0x10e   : > { %v433_v24 = vmax.f32 %v409_v20, 0.0 }
 0x10f   : > { %v443_v25 = vpack.c.bf16 %v435_v22, %v434_v21 }
 0x110   : > { %v442_v26 = vpack.c.bf16 %v433_v24, %v432_v23 }
 0x112   : > { %964 = vmatprep.mubr.bf16.mxu1 %v442_v26 }
 0x113   : > { %965 = vmatmul.mubr.bf16.gmra.mrb[8].mxu1 %v443_v25 }
 0x1ce   : > { %v954_v27 = vpop.f32.mrb[16].mxu0 }
 0x1cf   : > { %v549_v29 = vpop.f32.mrb[17].mxu0  ;;  %v558_v31 = vadd.f32 %v954_v27, %v792_v28 }
 0x1d0   : > { %v955_v30 = vpop.f32.mrb[18].mxu0  ;;  %v550_v34 = vadd.f32 %v792_v28, %v549_v29 }
 0x1d1   : > { %v561_v32 = vadd.f32 %v955_v30, %v792_v28  ;;  %v552_v33 = vpop.f32.mrb[19].mxu0 }
 0x1d2   : > { %v553_v35 = vadd.f32 %v792_v28, %v552_v33 }
 0x1d3   : > { %v851_v36 = vpack.c.bf16 %v561_v32, %v558_v31 }
 0x1d4   : > { %v846_v37 = vpack.c.bf16 %v553_v35, %v550_v34 }
 0x1d5   : > { %883 = vst [vmem:[%s1252_s6 + $0x8] sm:$0xff] %v851_v36  }
 0x1d6   : > { %847 = vst [vmem:[%s1252_s6] sm:$0xff] %v846_v37   ;;  %v958_v38 = vpop.f32.mrb[0].mxu1 }
 0x1d7   : > { %v565_v39 = vpop.f32.mrb[1].mxu1  ;;  %v574_v41 = vadd.f32 %v958_v38, %v792_v28 }
 0x1d8   : > { %v959_v40 = vpop.f32.mrb[2].mxu1  ;;  %v566_v44 = vadd.f32 %v792_v28, %v565_v39 }
 0x1d9   : > { %v577_v42 = vadd.f32 %v959_v40, %v792_v28  ;;  %v568_v43 = vpop.f32.mrb[3].mxu1 }
 0x1da   : > { %v569_v45 = vadd.f32 %v792_v28, %v568_v43 }
 0x1db   : > { %v861_v46 = vpack.c.bf16 %v577_v42, %v574_v41 }
 0x1dc   : > { %v856_v47 = vpack.c.bf16 %v569_v45, %v566_v44 }
 0x1dd   : > { %885 = vst [vmem:[%s1252_s6 + $0x18] sm:$0xff] %v861_v46  }
 0x1de   : > { %884 = vst [vmem:[%s1252_s6 + $0x10] sm:$0xff] %v856_v47   ;;  %v962_v48 = vpop.f32.mrb[4].mxu1 }
 0x1df   : > { %v581_v49 = vpop.f32.mrb[5].mxu1  ;;  %v590_v51 = vadd.f32 %v962_v48, %v792_v28 }
 0x1e0   : > { %v963_v50 = vpop.f32.mrb[6].mxu1  ;;  %v582_v54 = vadd.f32 %v792_v28, %v581_v49 }
 0x1e1   : > { %v593_v52 = vadd.f32 %v963_v50, %v792_v28  ;;  %v584_v53 = vpop.f32.mrb[7].mxu1 }
 0x1e2   : > { %v585_v55 = vadd.f32 %v792_v28, %v584_v53 }
 0x1e3   : > { %v871_v56 = vpack.c.bf16 %v593_v52, %v590_v51 }
 0x1e4   : > { %v866_v57 = vpack.c.bf16 %v585_v55, %v582_v54 }
 0x1e5   : > { %887 = vst [vmem:[%s1252_s6 + $0x28] sm:$0xff] %v871_v56  }
 0x1e6   : > { %886 = vst [vmem:[%s1252_s6 + $0x20] sm:$0xff] %v866_v57   ;;  %v966_v58 = vpop.f32.mrb[8].mxu1 }
 0x1e7   : > { %v597_v59 = vpop.f32.mrb[9].mxu1  ;;  %v606_v61 = vadd.f32 %v966_v58, %v792_v28 }
 0x1e8   : > { %v967_v60 = vpop.f32.mrb[10].mxu1  ;;  %v598_v0 = vadd.f32 %v792_v28, %v597_v59  ;;  %699 = sbr.rel (!%p1169_p5) target bundleno = 523 (0x20b), region = 44 }
 0x1e9   : > { %v609_v62 = vadd.f32 %v967_v60, %v792_v28  ;;  %v600_v63 = vpop.f32.mrb[11].mxu1 }
 0x1ea   : > { %v601_v1 = vadd.f32 %v792_v28, %v600_v63 }
 0x1eb   : > { %v881_v2 = vpack.c.bf16 %v609_v62, %v606_v61 }
 0x1ec   : > { %v876_v3 = vpack.c.bf16 %v601_v1, %v598_v0 }
 0x1ed   : > { %889 = vst [vmem:[%s1252_s6 + $0x38] sm:$0xff] %v881_v2  }
 0x1ee   : > { %888 = vst [vmem:[%s1252_s6 + $0x30] sm:$0xff] %v876_v3  }
 0x1ef   : > { %s1338_s9 = smov (!%p702_p11, %s701_s9), 16 }
 0x1f0   : > { %s1269_s10 = sshll.u32 %s1338_s9, 6 }
 0x1f1   : > { %s706_s11 = ssub.s32 1024, %s1269_s10 }
 0x1f2   : > { %707 = vsyncadd %s1264_s8, %s706_s11  ;;  %p820_p12 = scmp.ne.s32.totalorder %s1269_s10, 0  ;;  %s842_s12 = sshll.u32 %s1152_s22, 10 }
 0x1f3   : > { %s1278_s14 = scalar_lea.hbm %s1330_s5, %s842_s12  ;;  %s712_s7 = sshll.u32 %s1252_s6, 4  ;;  %s1281_s7 = int_to_ptr.vmem [resolvable:$true] %s712_s7 }
 0x1f4   : > { %s1034_s15 = scalar_lea.vmem %s1281_s7, %s1269_s10  ;;  %s1098_s16 = smov [#allocation2]  }
 0x1f5   : > { %p1035_p13 = scmp.ne.s32.totalorder %s1281_s7, %s1034_s15  ;;  %s1038_s17 = sshll.u32 %s1098_s16, 4  ;;  %s1039_s17 = int_to_ptr.vmem [resolvable:$false] %s1038_s17 }
 0x1f6   : > { %s1040_s22 = scalar_lea.vmem %s1039_s17, 2048  ;;  %p1041_p2 = scmp.lt.s32.totalorder %s1281_s7, %s1039_s17 }
 0x1f7   : > { %p1036_p0 = pnand %p1035_p13, %p820_p12  ;;  %p1042_p3 = scmp.lt.s32.totalorder %s1040_s22, %s1034_s15 }
 0x1f9   : > { %p1037_p1 = pneg %p1036_p0  ;;  %p1043_p4 = por %p1042_p3, %p1041_p2 }
 0x1fb   : > { %p1044_p5 = pnand %p1043_p4, %p1037_p1 }
 0x1fd   : > { %1047 = shalt.err (!%p1044_p5)
}
 0x1fe   : > { %s1048_s23 = scalar_lea.hbm %s1278_s14, %s1269_s10  ;;  %s1052_s30 = scalar_lea.hbm %s1330_s5, 1600 }
 0x1ff   : > { %p1049_p7 = scmp.ne.s32.totalorder %s1278_s14, %s1048_s23  ;;  %p1053_p10 = scmp.lt.u32.totalorder %s1278_s14, %s1330_s5 }
 0x200   : > { %p1054_p11 = scmp.lt.u32.totalorder %s1052_s30, %s1048_s23  ;;  %p1056_p0 = scmp.lt.u32.totalorder %s1048_s23, %s1278_s14 }
 0x201   : > { %p1050_p8 = pnand %p1049_p7, %p820_p12 }
 0x202   : > { %p1055_p13 = por %p1054_p11, %p1053_p10 }
 0x203   : > { %p1051_p9 = pneg %p1050_p8 }
 0x204   : > { %p1057_p1 = por %p1056_p0, %p1055_p13 }
 0x206   : > { %p1058_p2 = pnand %p1057_p1, %p1051_p9 }
 0x208   : > { %1061 = shalt.err (!%p1058_p2)
}
 0x209   : > { %s1099_s11 = smov 64   ;;  %s1100_s12 = smov 4  }
 0x20a   : > { %718 = dma.vmem_to_hbm [thread:$0]  (%p820_p12), %s1281_s7, %s1269_s10, %s1278_s14, %s1264_s8, %s1099_s11, %s1099_s11, %s1100_s12  }
 0x20b PF: > { %p989_p3 = scmp.ge.s32.totalorder %s1096_s21, 2  ;;  %s727_s13 = sand.u32 1, %s1084_s18  }
 0x20c   : > { %s728_s28 = scalar_lea.sflag [#allocation3], %s727_s13 }
 0x20d   : > { %p986_p4 = pnand %p989_p3, %p1173_p6 }
 0x20f   : > { %1079 = dma.done.wait (!%p986_p4), %s728_s28, 1024  }
 0x210   : > { %1081 = vsyncadd (!%p986_p4), %s728_s28, 4294966272  ;;  %p15_p5 = scmp.ge.s32.totalorder %s1156_s24, 4   ;;  %s1333_s18 = smov %s1088_s19 }
 0x211   : > { %s1334_s19 = smov %s1092_s20  ;;  %s1335_s20 = smov %s1167_s27 }
 0x212   : > { %s1336_s21 = smov %s1156_s24  ;;  %17 = sbr.rel (!%p15_p5) target bundleno = 3 (0x3), region = 75 }
 0x219   :  { %733 = vsyncpa [#allocation3], 1 }
 0x21a   :  { %735 = vsyncpa [#allocation3 + $0x1], 1 }

</bundles_post_ra>
